<compile_context>
chip_gen: v6e
topology: v6e:2x2x1
jax: 0.10.0
libtpu: 0.0.40
codegen_flags: <defaults>
</compile_context>

<pallas_src>
import math
from functools import partial

import jax
import jax.numpy as jnp
from jax.experimental import pallas as pl
from jax.experimental.pallas import tpu as pltpu

SQRT2 = math.sqrt(2.0)


# --------------------------------------------------------------------------
# Pallas kernels
# --------------------------------------------------------------------------
def _modconv3x3_compute(xt_ref, w_ref, s_ref, noise_ref, nb_ref, mxu_dtype):
    """Shared body: modulated 3x3 conv (merged K) + demod + noise + leaky relu.

    xt_ref   : (1, K, T)     im2col taps, K = 9*C_in, T = HW tile
    w_ref    : (C_out, K)    base conv weight, K ordered (kh, kw, ci)
    s_ref    : (1, 1, K)     per-batch modulation vector, tiled 9x over taps
    noise_ref: (1, 1, T)     injected noise tile
    nb_ref   : (C_out, 2)    [:,0] = noise scale, [:,1] = conv bias
    returns  : (C_out, T)    f32 activation tile
    """
    # modulation (f32) and demodulation coefficients (f32)
    w_mod = w_ref[...] * s_ref[0]                                   # (C_out, K)
    d = jax.lax.rsqrt(jnp.sum(w_mod * w_mod, axis=1, keepdims=True) + 1e-8)

    # single merged-K MXU matmul; bf16 feed, f32 accumulation
    acc = jnp.dot(w_mod.astype(mxu_dtype), xt_ref[0].astype(mxu_dtype),
                  preferred_element_type=jnp.float32)               # (C_out, T)
    acc = acc * d

    # noise injection + fused_leaky_relu (slope 0.2, gain sqrt(2)) in f32
    nb = nb_ref[...]
    acc = acc + nb[:, 0:1] * noise_ref[0] + nb[:, 1:2]
    return jnp.where(acc >= 0.0, acc, 0.2 * acc) * SQRT2


def _styleconv_kernel(xt_ref, w_ref, s_ref, noise_ref, nb_ref, h_ref, *,
                      mxu_dtype):
    h = _modconv3x3_compute(xt_ref, w_ref, s_ref, noise_ref, nb_ref, mxu_dtype)
    h_ref[0] = h.astype(h_ref.dtype)


def _styleconv_rgb_kernel(xt_ref, w_ref, s_ref, noise_ref, nb_ref,
                          wrgb_ref, srgb_ref, brgb_ref, h_ref, rgb_ref, *,
                          mxu_dtype):
    """conv1 + fused ToRGB: reuse the VMEM-resident activation tile for the
    1x1 modulated conv to RGB (demodulate=False) and emit both outputs."""
    h = _modconv3x3_compute(xt_ref, w_ref, s_ref, noise_ref, nb_ref, mxu_dtype)
    h_ref[0] = h.astype(h_ref.dtype)

    w_rgb = wrgb_ref[...] * srgb_ref[0]                              # (3, C_out)
    rgb = jnp.dot(w_rgb.astype(mxu_dtype), h.astype(mxu_dtype),
                  preferred_element_type=jnp.float32)                # (3, T)
    rgb_ref[0] = (rgb + brgb_ref[...]).astype(rgb_ref.dtype)


# --------------------------------------------------------------------------
# Wrappers (glue: im2col, affine hoist, pallas_call plumbing)
# --------------------------------------------------------------------------
def _hw_tile(hw):
    for t in (512, 256, 128):
        if hw >= t and hw % t == 0:
            return t
    return hw


def _im2col3x3(x):
    """(B, C, H, W) -> (B, 9*C, H*W), K ordered (kh, kw, ci) to match weights."""
    B, C, H, W = x.shape
    xp = jnp.pad(x, ((0, 0), (0, 0), (1, 1), (1, 1)))
    taps = [xp[:, :, dh:dh + H, dw:dw + W].reshape(B, C, H * W)
            for dh in range(3) for dw in range(3)]
    return jnp.stack(taps, axis=1).reshape(B, 9 * C, H * W)


def _conv_inputs(x, style, noise, weight, aff_w, aff_b, noise_scale, bias,
                 mxu_dtype):
    B, C_in, H, W = x.shape
    C_out = weight.shape[0]
    HW = H * W
    K = 9 * C_in

    xt = _im2col3x3(x).astype(mxu_dtype)                       # (B, K, HW)
    wk = jnp.transpose(weight, (0, 2, 3, 1)).reshape(C_out, K)  # f32
    s = style @ aff_w.T + aff_b                                 # hoisted affine
    s9 = jnp.tile(s, (1, 9)).reshape(B, 1, K)                   # (B, 1, K)
    nb = jnp.stack([noise_scale, bias], axis=1)                 # (C_out, 2)
    noise2 = noise.reshape(B, 1, HW)
    return xt, wk, s9, noise2, nb, (B, C_in, C_out, H, W, HW, K)


def style_conv3x3(x, style, noise, weight, aff_w, aff_b, noise_scale, bias, *,
                  mxu_dtype=jnp.bfloat16):
    xt, wk, s9, noise2, nb, dims = _conv_inputs(
        x, style, noise, weight, aff_w, aff_b, noise_scale, bias, mxu_dtype)
    B, _, C_out, H, W, HW, K = dims
    T = _hw_tile(HW)

    h = pl.pallas_call(
        partial(_styleconv_kernel, mxu_dtype=mxu_dtype),
        out_shape=jax.ShapeDtypeStruct((B, C_out, HW), jnp.float32),
        grid=(B, HW // T),
        in_specs=[
            pl.BlockSpec((1, K, T), lambda b, q: (b, 0, q)),
            pl.BlockSpec((C_out, K), lambda b, q: (0, 0)),
            pl.BlockSpec((1, 1, K), lambda b, q: (b, 0, 0)),
            pl.BlockSpec((1, 1, T), lambda b, q: (b, 0, q)),
            pl.BlockSpec((C_out, 2), lambda b, q: (0, 0)),
        ],
        out_specs=pl.BlockSpec((1, C_out, T), lambda b, q: (b, 0, q)),
        compiler_params=pltpu.CompilerParams(
            dimension_semantics=("parallel", "parallel")),
    )(xt, wk, s9, noise2, nb)
    return h.reshape(B, C_out, H, W)


def style_conv3x3_to_rgb(x, style, noise, conv_p, rgb_p, *,
                         mxu_dtype=jnp.bfloat16):
    """StyleConv (3x3, demod) fused with ToRGB (1x1, no demod) -> (h, rgb)."""
    xt, wk, s9, noise2, nb, dims = _conv_inputs(
        x, style, noise, conv_p["weight"], conv_p["aff_w"], conv_p["aff_b"],
        conv_p["noise_scale"], conv_p["bias"], mxu_dtype)
    B, _, C_out, H, W, HW, K = dims
    T = _hw_tile(HW)

    wrgb = rgb_p["weight"].reshape(3, C_out)                       # 1x1 conv
    srgb = (style @ rgb_p["aff_w"].T + rgb_p["aff_b"]).reshape(B, 1, C_out)
    brgb = rgb_p["bias"].reshape(3, 1)

    h, rgb = pl.pallas_call(
        partial(_styleconv_rgb_kernel, mxu_dtype=mxu_dtype),
        out_shape=(jax.ShapeDtypeStruct((B, C_out, HW), jnp.float32),
                   jax.ShapeDtypeStruct((B, 3, HW), jnp.float32)),
        grid=(B, HW // T),
        in_specs=[
            pl.BlockSpec((1, K, T), lambda b, q: (b, 0, q)),
            pl.BlockSpec((C_out, K), lambda b, q: (0, 0)),
            pl.BlockSpec((1, 1, K), lambda b, q: (b, 0, 0)),
            pl.BlockSpec((1, 1, T), lambda b, q: (b, 0, q)),
            pl.BlockSpec((C_out, 2), lambda b, q: (0, 0)),
            pl.BlockSpec((3, C_out), lambda b, q: (0, 0)),
            pl.BlockSpec((1, 1, C_out), lambda b, q: (b, 0, 0)),
            pl.BlockSpec((3, 1), lambda b, q: (0, 0)),
        ],
        out_specs=(pl.BlockSpec((1, C_out, T), lambda b, q: (b, 0, q)),
                   pl.BlockSpec((1, 3, T), lambda b, q: (b, 0, q))),
        compiler_params=pltpu.CompilerParams(
            dimension_semantics=("parallel", "parallel")),
    )(xt, wk, s9, noise2, nb, wrgb, srgb, brgb)
    return h.reshape(B, C_out, H, W), rgb.reshape(B, 3, H, W)


def style_block_forward(x, style, params, n0, n1, *, mxu_dtype=jnp.bfloat16):
    """StyleBlock.forward(x, style_code) for upsample=False, mask=None, skip=None."""
    h = style_conv3x3(x, style, n0, **params["conv0"], mxu_dtype=mxu_dtype)
    h, rgb = style_conv3x3_to_rgb(h, style, n1, params["conv1"],
                                  params["to_rgb"], mxu_dtype=mxu_dtype)
    return h, rgb


# --------------------------------------------------------------------------
# Pure-JAX f32 reference (PyTorch semantics, for correctness check)
# --------------------------------------------------------------------------
def _ref_modconv(x, style, weight, aff_w, aff_b, demodulate, padding):
    B = x.shape[0]
    s = style @ aff_w.T + aff_b                     # (B, C_in)
    w = weight[None] * s[:, None, :, None, None]
    if demodulate:
        d = jax.lax.rsqrt(jnp.sum(w * w, axis=(2, 3, 4)) + 1e-8)
        w = w * d[:, :, None, None, None]
    outs = []
    for b in range(B):
        o = jax.lax.conv_general_dilated(
            x[b:b + 1], w[b], window_strides=(1, 1),
            padding=[(padding, padding), (padding, padding)],
            dimension_numbers=("NCHW", "OIHW", "NCHW"))
        outs.append(o)
    return jnp.concatenate(outs, axis=0)


def _ref_style_conv(x, style, noise, p):
    o = _ref_modconv(x, style, p["weight"], p["aff_w"], p["aff_b"], True, 1)
    o = o + p["noise_scale"].reshape(1, -1, 1, 1) * noise
    o = o + p["bias"].reshape(1, -1, 1, 1)
    return jnp.where(o >= 0, o, 0.2 * o) * SQRT2


def _ref_block(x, style, params, n0, n1):
    h = _ref_style_conv(x, style, n0, params["conv0"])
    h = _ref_style_conv(h, style, n1, params["conv1"])
    pr = params["to_rgb"]
    rgb = _ref_modconv(h, style, pr["weight"], pr["aff_w"], pr["aff_b"], False, 0)
    rgb = rgb + pr["bias"].reshape(1, 3, 1, 1)
    return h, rgb


# --------------------------------------------------------------------------
if __name__ == "__main__":
    B, C_in, C_out, S, H, W = 2, 8, 8, 16, 16, 16   # in==out -> ToRGB has no upsample

    key = jax.random.PRNGKey(0)
    keys = jax.random.split(key, 12)

    def kaiming(k, shape, a=0.2):
        fan_in = shape[1] * shape[2] * shape[3]
        gain = math.sqrt(2.0 / (1.0 + a * a))
        return jax.random.normal(k, shape, jnp.float32) * (gain / math.sqrt(fan_in))

    def make_styleconv_params(k, cin, cout):
        k0, k1, k2, k3 = jax.random.split(k, 4)
        return dict(
            weight=kaiming(k0, (cout, cin, 3, 3)),
            aff_w=jax.random.normal(k1, (cin, S), jnp.float32) / math.sqrt(S),
            aff_b=jnp.ones((cin,), jnp.float32),        # LinearLayer bias_init=1.0
            # NoiseInjection.scale_factor / StyleConv.bias are zeros in __init__;
            # use small deterministic non-zero values to exercise those paths.
            noise_scale=0.1 * jax.random.normal(k2, (cout,), jnp.float32),
            bias=0.1 * jax.random.normal(k3, (cout,), jnp.float32),
        )

    params = dict(
        conv0=make_styleconv_params(keys[0], C_in, C_out),
        conv1=make_styleconv_params(keys[1], C_out, C_out),
        to_rgb=dict(
            weight=kaiming(keys[2], (3, C_out, 1, 1)),
            aff_w=jax.random.normal(keys[3], (C_out, S), jnp.float32) / math.sqrt(S),
            aff_b=jnp.ones((C_out,), jnp.float32),
            bias=0.1 * jax.random.normal(keys[4], (3,), jnp.float32),  # ToRGB bias
        ),
    )

    x = jax.random.normal(keys[5], (B, C_in, H, W), jnp.float32)
    style = jax.random.normal(keys[6], (B, S), jnp.float32)
    n0 = jax.random.normal(keys[7], (B, 1, H, W), jnp.float32)   # conv0 noise
    n1 = jax.random.normal(keys[8], (B, 1, H, W), jnp.float32)   # conv1 noise

    h_ref, rgb_ref = _ref_block(x, style, params, n0, n1)

    # 1) strict check: f32 MXU feed vs. pure-f32 reference.
    h32, rgb32 = style_block_forward(x, style, params, n0, n1,
                                     mxu_dtype=jnp.float32)
    jax.block_until_ready((h32, rgb32))
    assert h32.shape == (B, C_out, H, W) and rgb32.shape == (B, 3, H, W)
    assert jnp.allclose(h32, h_ref, atol=2e-3, rtol=2e-3), \
        float(jnp.max(jnp.abs(h32 - h_ref)))
    assert jnp.allclose(rgb32, rgb_ref, atol=2e-3, rtol=2e-3), \
        float(jnp.max(jnp.abs(rgb32 - rgb_ref)))

    # 2) perf config (default): bf16 MXU operands, f32 accumulation + f32
    #    demod/noise/bias/leaky-ReLU epilogue.  Tolerance reflects bf16 input
    #    rounding (~1e-2 at these magnitudes), not an algorithmic difference.
    h, rgb = style_block_forward(x, style, params, n0, n1)
    jax.block_until_ready((h, rgb))
    assert h.shape == (B, C_out, H, W) and rgb.shape == (B, 3, H, W)
    assert jnp.allclose(h, h_ref, atol=1e-1, rtol=1e-1), \
        float(jnp.max(jnp.abs(h - h_ref)))
    assert jnp.allclose(rgb, rgb_ref, atol=1e-1, rtol=1e-1), \
        float(jnp.max(jnp.abs(rgb - rgb_ref)))

    print("KERNEL_OK")
</pallas_src>

<mosaic_0001>
module attributes {stable_mosaic.version = 11 : i64} {
  func.func @_styleconv_kernel(%arg0: i32, %arg1: i32, %arg2: memref<1x72x256xf32, #tpu.memory_space<vmem>>, %arg3: memref<8x72xf32, #tpu.memory_space<vmem>>, %arg4: memref<1x1x72xf32, #tpu.memory_space<vmem>>, %arg5: memref<1x1x256xf32, #tpu.memory_space<vmem>>, %arg6: memref<8x2xf32, #tpu.memory_space<vmem>>, %arg7: memref<1x8x256xf32, #tpu.memory_space<vmem>>) attributes {dimension_semantics = [#tpu.dimension_semantics<parallel>, #tpu.dimension_semantics<parallel>], iteration_bounds = array<i64: 2, 1>, scalar_prefetch = 0 : i64, scratch_operands = 0 : i64, tpu.core_type = #tpu.core_type<tc>, window_params = [{transform_indices = @transform_0, window_bounds = array<i64: 1, 72, 256>}, {pipeline_mode = #tpu.pipeline_mode<synchronous>, transform_indices = @transform_1, window_bounds = array<i64: 8, 72>}, {transform_indices = @transform_2, window_bounds = array<i64: 1, 1, 72>}, {transform_indices = @transform_3, window_bounds = array<i64: 1, 1, 256>}, {pipeline_mode = #tpu.pipeline_mode<synchronous>, transform_indices = @transform_4, window_bounds = array<i64: 8, 2>}, {transform_indices = @transform_5, window_bounds = array<i64: 1, 8, 256>}]} {
    %c0 = arith.constant 0 : index
    %c0_0 = arith.constant 0 : index
    %0 = vector.load %arg3[%c0, %c0_0] : memref<8x72xf32, #tpu.memory_space<vmem>>, vector<8x72xf32>
    %c0_1 = arith.constant 0 : index
    %c0_2 = arith.constant 0 : index
    %c0_3 = arith.constant 0 : index
    %1 = vector.load %arg4[%c0_1, %c0_2, %c0_3] : memref<1x1x72xf32, #tpu.memory_space<vmem>>, vector<1x1x72xf32>
    %2 = vector.shape_cast %1 : vector<1x1x72xf32> to vector<1x72xf32>
    %3 = vector.broadcast %2 : vector<1x72xf32> to vector<8x72xf32>
    %4 = arith.mulf %0, %3 : vector<8x72xf32>
    %5 = arith.mulf %4, %4 : vector<8x72xf32>
    %cst = arith.constant dense<0.000000e+00> : vector<8xf32>
    %6 = vector.multi_reduction <add>, %5, %cst [1] : vector<8x72xf32> to vector<8xf32>
    %7 = vector.shape_cast %6 : vector<8xf32> to vector<8x1xf32>
    %cst_4 = arith.constant 9.99999993E-9 : f32
    %8 = vector.broadcast %cst_4 : f32 to vector<8x1xf32>
    %9 = arith.addf %7, %8 : vector<8x1xf32>
    %10 = math.rsqrt %9 : vector<8x1xf32>
    %c0_5 = arith.constant 0 : index
    %c0_6 = arith.constant 0 : index
    %c0_7 = arith.constant 0 : index
    %11 = vector.load %arg2[%c0_5, %c0_6, %c0_7] : memref<1x72x256xf32, #tpu.memory_space<vmem>>, vector<1x72x256xf32>
    %12 = vector.shape_cast %11 : vector<1x72x256xf32> to vector<72x256xf32>
    %cst_8 = arith.constant dense<0.000000e+00> : vector<8x256xf32>
    %13 = tpu.matmul %4, %12, %cst_8 {dimension_numbers = #tpu.dot_dimension_numbers<[1], [0], [0], [1], [0, 0, 1, 1], [], []>} : vector<8x72xf32>, vector<72x256xf32>, vector<8x256xf32> -> vector<8x256xf32>
    %14 = vector.broadcast %10 : vector<8x1xf32> to vector<8x256xf32>
    %15 = arith.mulf %13, %14 : vector<8x256xf32>
    %c0_9 = arith.constant 0 : index
    %c0_10 = arith.constant 0 : index
    %16 = vector.load %arg6[%c0_9, %c0_10] : memref<8x2xf32, #tpu.memory_space<vmem>>, vector<8x2xf32>
    %17 = vector.extract_strided_slice %16 {offsets = [0, 0], sizes = [8, 1], strides = [1, 1]} : vector<8x2xf32> to vector<8x1xf32>
    %c0_11 = arith.constant 0 : index
    %c0_12 = arith.constant 0 : index
    %c0_13 = arith.constant 0 : index
    %18 = vector.load %arg5[%c0_11, %c0_12, %c0_13] : memref<1x1x256xf32, #tpu.memory_space<vmem>>, vector<1x1x256xf32>
    %19 = vector.shape_cast %18 : vector<1x1x256xf32> to vector<1x256xf32>
    %20 = vector.broadcast %17 : vector<8x1xf32> to vector<8x256xf32>
    %21 = vector.broadcast %19 : vector<1x256xf32> to vector<8x256xf32>
    %22 = arith.mulf %20, %21 : vector<8x256xf32>
    %23 = arith.addf %15, %22 : vector<8x256xf32>
    %24 = vector.extract_strided_slice %16 {offsets = [0, 1], sizes = [8, 1], strides = [1, 1]} : vector<8x2xf32> to vector<8x1xf32>
    %25 = vector.broadcast %24 : vector<8x1xf32> to vector<8x256xf32>
    %26 = arith.addf %23, %25 : vector<8x256xf32>
    %cst_14 = arith.constant 0.000000e+00 : f32
    %27 = vector.broadcast %cst_14 : f32 to vector<8x256xf32>
    %28 = arith.cmpf oge, %26, %27 : vector<8x256xf32>
    %cst_15 = arith.constant 2.000000e-01 : f32
    %29 = vector.broadcast %cst_15 : f32 to vector<8x256xf32>
    %30 = arith.mulf %29, %26 : vector<8x256xf32>
    %31 = arith.select %28, %26, %30 : vector<8x256xi1>, vector<8x256xf32>
    %cst_16 = arith.constant 1.41421354 : f32
    %32 = vector.broadcast %cst_16 : f32 to vector<8x256xf32>
    %33 = arith.mulf %31, %32 : vector<8x256xf32>
    %c0_17 = arith.constant 0 : index
    %c0_18 = arith.constant 0 : index
    %c0_19 = arith.constant 0 : index
    %34 = vector.load %arg7[%c0_17, %c0_18, %c0_19] : memref<1x8x256xf32, #tpu.memory_space<vmem>>, vector<1x8x256xf32>
    %35 = vector.shape_cast %34 : vector<1x8x256xf32> to vector<8x256xf32>
    %36 = vector.shape_cast %33 : vector<8x256xf32> to vector<1x8x256xf32>
    tpu.vector_store %arg7[%c0_17, %c0_18, %c0_19], %36 {strides = array<i32>} : memref<1x8x256xf32, #tpu.memory_space<vmem>>, vector<1x8x256xf32>,
    return
  }
  func.func @transform_0(%arg0: i32, %arg1: i32) -> (i32, i32, i32) {
    %c0_i32 = arith.constant 0 : i32
    %c0_i32_0 = arith.constant 0 : i32
    return %arg0, %c0_i32, %arg1 : i32, i32, i32
  }
  func.func @transform_1(%arg0: i32, %arg1: i32) -> (i32, i32) {
    %c0_i32 = arith.constant 0 : i32
    %c0_i32_0 = arith.constant 0 : i32
    %c0_i32_1 = arith.constant 0 : i32
    return %c0_i32, %c0_i32_0 : i32, i32
  }
  func.func @transform_2(%arg0: i32, %arg1: i32) -> (i32, i32, i32) {
    %c0_i32 = arith.constant 0 : i32
    %c0_i32_0 = arith.constant 0 : i32
    %c0_i32_1 = arith.constant 0 : i32
    return %arg0, %c0_i32, %c0_i32_0 : i32, i32, i32
  }
  func.func @transform_3(%arg0: i32, %arg1: i32) -> (i32, i32, i32) {
    %c0_i32 = arith.constant 0 : i32
    %c0_i32_0 = arith.constant 0 : i32
    return %arg0, %c0_i32, %arg1 : i32, i32, i32
  }
  func.func @transform_4(%arg0: i32, %arg1: i32) -> (i32, i32) {
    %c0_i32 = arith.constant 0 : i32
    %c0_i32_0 = arith.constant 0 : i32
    %c0_i32_1 = arith.constant 0 : i32
    return %c0_i32, %c0_i32_0 : i32, i32
  }
  func.func @transform_5(%arg0: i32, %arg1: i32) -> (i32, i32, i32) {
    %c0_i32 = arith.constant 0 : i32
    %c0_i32_0 = arith.constant 0 : i32
    return %arg0, %c0_i32, %arg1 : i32, i32, i32
  }
}

</mosaic_0001>

<bundles_post_ra>
// kernel: tpu_custom_call.1
= control target key start
LH: loop header
LB: loop body
LE: loop exit
PB: predicated region body
PF: predicated region fallthrough
CT: control target
= control target key end

     0   :  { %s1087_s0 = inlined_call_operand.hbm [shape: f32[2,72,256], index: 0, kind: input, shape index: {}]   ;;  %s1088_s1 = inlined_call_operand.vmem [shape: f32[8,72], index: 1, kind: input, shape index: {}]   ;;  %s1089_s2 = inlined_call_operand.hbm [shape: f32[2,1,72], index: 2, kind: input, shape index: {}]   ;;  %s1090_s3 = inlined_call_operand.vmem [shape: f32[2,1,256], index: 3, kind: input, shape index: {}]   ;;  %s1091_s4 = inlined_call_operand.vmem [shape: f32[8,2], index: 4, kind: input, shape index: {}]   ;;  %s1092_s5 = inlined_call_operand.hbm [shape: f32[2,8,256], index: 5, kind: output, shape index: {}]  }
   0x1   :  { %1094 = sst [smem:[#allocation12_spill]] %s1087_s0 }
   0x2   :  { %10 = vsyncpa [#allocation3], 0 }
   0x3   :  { %12 = vsyncpa [#allocation3 + $0x1], 0 }
   0x4   :  { %13 = vsyncpa [#allocation6], 0 }
   0x5   :  { %15 = vsyncpa [#allocation6 + $0x1], 0 }
   0x6   :  { %16 = vsyncpa [#allocation4], 0 }
   0x7   :  { %18 = vsyncpa [#allocation4 + $0x1], 0  ;;  %s891_s18 = smov 0   ;;  %s893_s19 = smov 0  }
   0x8   :  { %s895_s20 = smov 0   ;;  %s897_s21 = smov 0  }
   0x9   :  { %s899_s22 = smov 0   ;;  %s901_s23 = smov 0  }
   0xa LB: > { %s614_s24 = sadd.s32 4294967295, %s851_s23   ;;  %s615_s25 = sadd.s32 4294967294, %s851_s23   ;;  %s851_s23 = sphi %s901_s23, %s24_s23   ;;  %s847_s22 = sphi %s899_s22, %s1109_s22   ;;  %s843_s21 = sphi %s897_s21, %s1108_s21   ;;  %s839_s20 = sphi %s895_s20, %s1107_s20   ;;  %s835_s19 = sphi %s893_s19, %s1106_s19   ;;  %s831_s18 = sphi %s891_s18, %s1105_s18  }
   0xb   : > { %s36_s26 = sadd.s32 1, %s847_s22  ;;  %s45_s27 = sadd.s32 1, %s839_s20 }
   0xc   : > { %p38_p0 = scmp.ge.s32.totalorder %s36_s26, 2  ;;  %p52_p1 = scmp.ne.s32.totalorder %s839_s20, %s835_s19 }
   0xd   : > { %p53_p2 = scmp.eq.s32.totalorder %s851_s23, 0  ;;  %p58_p3 = scmp.ne.s32.totalorder %s835_s19, %s831_s18 }
   0xe   : > { %s1111_s26 = smov (%p38_p0, %s36_s26), 0  ;;  %p59_p5 = scmp.eq.s32.totalorder %s614_s24, 0 }
   0xf   : > { %1095 = sst [smem:[#allocation11_spill]] %s1111_s26  ;;  %p932_p4 = por %p53_p2, %p52_p1 }
  0x10   : > { %s40_s29 = ssub.s32 %s847_s22, %s1111_s26  ;;  %p180_p6 = scmp.eq.s32.totalorder %s614_s24, 1 }
  0x11   : > { %p43_p7 = scmp.eq.s32.totalorder %s40_s29, 0  ;;  %p938_p8 = por %p59_p5, %p58_p3 }
  0x12   : > { %p942_p9 = por %p180_p6, %p52_p1  ;;  %p186_p10 = scmp.eq.s32.totalorder %s615_s25, 1 }
  0x13   : > { %s947_s7 = scalar_select %p43_p7, %s839_s20, %s45_s27  }
  0x14   : > { %p949_p11 = por %p186_p10, %p58_p3  ;;  %p651_p13 = scmp.lt.s32.totalorder %s851_s23, 2 }
  0x15   : > { %s956_s9 = sand.u32 1, %s839_s20   ;;  %s632_s11 = smul.u32 2304, %s847_s22 }
  0x16   : > { %s631_s10 = smul.u32 144, %s956_s9  ;;  %p962_p0 = pnand %p651_p13, %p932_p4 }
  0x17   : > { %s1101_s0 = sld [smem:[#allocation12_spill]]  ;;  %p620_p1 = scmp.ge.s32.totalorder %s851_s23, 1 }
  0x18   : > { %s216_s16 = scalar_lea.vmem [#allocation2], %s631_s10  ;;  %s213_s24 = scalar_lea.sflag [#allocation3], %s956_s9 }
  0x19   : > { %s225_s17 = sshll.u32 %s216_s16, 4  ;;  %p713_p2 = pneg %p962_p0  ;;  %s226_s17 = int_to_ptr.vmem [resolvable:$true] %s225_s17 }
  0x1a   : > { %s724_s25 = scalar_lea.vmem %s226_s17, 2304  ;;  %s853_s27 = smov [#allocation2]  }
  0x1b   : > { %p725_p3 = scmp.ne.s32.totalorder %s226_s17, %s724_s25  ;;  %s729_s28 = sshll.u32 %s853_s27, 4  ;;  %s730_s28 = int_to_ptr.vmem [resolvable:$false] %s729_s28 }
  0x1c   : > { %s731_s29 = scalar_lea.vmem %s730_s28, 4608  ;;  %p732_p6 = scmp.lt.s32.totalorder %s226_s17, %s730_s28 }
  0x1d   : > { %s224_s15 = scalar_lea.hbm %s1101_s0, %s632_s11  ;;  %p727_p4 = pnand %p725_p3, %p713_p2 }
  0x1e   : > { %p733_p7 = scmp.lt.s32.totalorder %s731_s29, %s724_s25 }
  0x1f   : > { %p728_p5 = pneg %p727_p4 }
  0x20   : > { %p734_p10 = por %p733_p7, %p732_p6 }
  0x22   : > { %p735_p13 = pnand %p734_p10, %p728_p5 }
  0x24   : > { %738 = shalt.err (!%p735_p13)
}
  0x25   : > { %s854_s10 = smov 256   ;;  %s855_s11 = smov 16  }
  0x26   : > { %643 = dma.hbm_to_vmem [thread:$0]  (!%p962_p0), %s224_s15, 2304, %s226_s17, %s213_s24, %s854_s10, %s854_s10, %s855_s11  }
  0x27   : > { %p262_p3 = scmp.lt.s32.totalorder %s851_s23, 3  ;;  %s619_s13 = sshll.u32 %s847_s22, 4 }
  0x28   : > { %s243_s27 = scalar_lea.hbm %s1089_s2, %s619_s13  ;;  %s238_s28 = scalar_lea.vmem [#allocation5], %s956_s9 }
  0x29   : > { %p982_p4 = pnand %p620_p1, %p262_p3  ;;  %s245_s29 = sshll.u32 %s238_s28, 4  ;;  %s246_s29 = int_to_ptr.vmem [resolvable:$true] %s245_s29 }
  0x2a   : > { %s236_s0 = scalar_lea.sflag [#allocation6], %s956_s9  ;;  %s752_s26 = scalar_lea.vmem %s246_s29, 16 }
  0x2b   : > { %p753_p5 = scmp.ne.s32.totalorder %s246_s29, %s752_s26  ;;  %s856_s15 = smov [#allocation5]  }
  0x2c   : > { %s757_s17 = sshll.u32 %s856_s15, 4  ;;  %s758_s17 = int_to_ptr.vmem [resolvable:$false] %s757_s17 }
  0x2d   : > { %p755_p6 = pnand %p753_p5, %p713_p2  ;;  %s759_s24 = scalar_lea.vmem %s758_s17, 32 }
  0x2e   : > { %p760_p1 = scmp.lt.s32.totalorder %s246_s29, %s758_s17  ;;  %p761_p10 = scmp.lt.s32.totalorder %s759_s24, %s752_s26 }
  0x2f   : > { %p756_p7 = pneg %p755_p6 }
  0x30   : > { %p762_p13 = por %p761_p10, %p760_p1 }
  0x32   : > { %p763_p3 = pnand %p762_p13, %p756_p7 }
  0x34   : > { %766 = shalt.err (!%p763_p3)
}
  0x35   : > { %646 = dma.hbm_to_vmem [thread:$0]  (!%p962_p0), %s243_s27, 16, %s246_s29, %s236_s0  }
  0x36   : > { %266 = sbr.rel (%p982_p4) target bundleno = 301 (0x12d), region = 40  ;;  %s999_s9 = sand.u32 (!%p982_p4), 1, %s835_s19  }
  0x37   : > { %s633_s10 = smul.u32 (!%p982_p4), 144, %s999_s9  ;;  %s269_s11 = scalar_lea.sflag (!%p982_p4), [#allocation3], %s999_s9 }
  0x39   : > { %s1003_s13 = scalar_lea.vmem (!%p982_p4), [#allocation2], %s633_s10 }
  0x3b   : > { %818 = dma.done.wait (%p938_p8), %s269_s11, 2304  }
  0x3c   : > { %820 = vsyncadd (%p938_p8), %s269_s11, 4294964992  ;;  %s278_s0 = scalar_lea.sflag [#allocation6], %s999_s9  ;;  %s280_s26 = scalar_lea.vmem [#allocation5], %s999_s9 }
  0x3d   : > { %822 = dma.done.wait (%p938_p8), %s278_s0, 16  }
  0x3e   : > { %824 = vsyncadd (%p938_p8), %s278_s0, 4294967280  ;;  %v857_v0 = vmov 0.0   ;;  %v858_v1 = vmov 0   ;;  %v859_v2 = vmov 1   ;;  %v363_v3 = vld [vmem:[%s1003_s13 + $0x88] sm:$0xff]  ;;  %v362_v4 = vld [vmem:[%s1003_s13 + $0x80] sm:$0xff]  ;;  %v448_v29 = vlaneseq }
  0x3f   : > { %431 = vmatprep.mubr.f32.mxu0 %v857_v0  ;;  %706 = vset.pattern.permute.xlu0 %v858_v1  ;;  %v361_v5 = vld [vmem:[%s1003_s13 + $0x78] sm:$0xff]  ;;  %v360_v6 = vld [vmem:[%s1003_s13 + $0x70] sm:$0xff]  ;;  %v359_v7 = vld [vmem:[%s1003_s13 + $0x68] sm:$0xff]  ;;  %vm340_vm0 = vcmask 588800   ;;  %p321_p8 = scmp.lt.s32.totalorder %s843_s21, 1  ;;  %s621_s17 = sshll.u32 %s999_s9, 4 }
  0x40   : > { %707 = vset.pattern.permute.xlu1 %v859_v2  ;;  %381 = vmatprep.subr.mxu0 %v363_v3  ;;  %v358_v8 = vld [vmem:[%s1003_s13 + $0x60] sm:$0xff]  ;;  %v357_v9 = vld [vmem:[%s1003_s13 + $0x58] sm:$0xff]  ;;  %v356_v10 = vld [vmem:[%s1003_s13 + $0x50] sm:$0xff]  ;;  %v449_v30 = vshrl.u32 %v448_v29, 7  ;;  %s630_s24 = sshll.u32 %s843_s21, 8  ;;  %s318_s10 = scalar_lea.vmem [#allocation7], %s621_s17 }
  0x41   : > { %382 = vmatpush1.msra.mxu0 %v362_v4  ;;  %v355_v11 = vld [vmem:[%s1003_s13 + $0x48] sm:$0xff]  ;;  %v330_v12 = vld [vmem:[%s1088_s1] sm:$0xff]  ;;  %v353_v17 = vld [vmem:[%s1003_s13 + $0x38] sm:$0xff]  ;;  %s322_s25 = scalar_select %p321_p8, %s843_s21, 1 }
  0x42   : > { %383 = vmatprep.subr.mxu0 %v361_v5  ;;  %v623_v13 = vld [vmem:[%s280_s26] ss:$0 sm:$0xff]  ;;  %v351_v20 = vld [vmem:[%s1003_s13 + $0x28] sm:$0xff]  ;;  %v349_v23 = vld [vmem:[%s1003_s13 + $0x18] sm:$0xff]  ;;  %v450_v31 = vsub.s32 0, %v449_v30  ;;  %v454_v33 = vsub.s32 1, %v449_v30  ;;  %s493_s26 = scalar_lea.hbm %s1092_s5, %s630_s24 }
  0x43   : > { %384 = vmatpush1.msra.mxu0 %v360_v6  ;;  %v440_v14 = vld [vmem:[%s1091_s4] sm:$0xff]  ;;  %v338_v16 = vmul.f32 %v623_v13, %v330_v12  ;;  %v347_v25 = vld [vmem:[%s1003_s13 + $0x8] sm:$0xff]  ;;  %s622_s27 = sshll.u32 %s322_s25, 1  ;;  %s495_s11 = sshll.u32 %s318_s10, 4  ;;  %s496_s11 = int_to_ptr.vmem [resolvable:$true] %s495_s11 }
  0x44   : > { %385 = vmatprep.subr.mxu0 %v359_v7  ;;  %v354_v15 = vld [vmem:[%s1003_s13 + $0x40] sm:$0xff]  ;;  %463 = vperm.xlu1 %707, %v440_v14   ;;  %v352_v18 = vld [vmem:[%s1003_s13 + $0x30] sm:$0xff]  ;;  %s327_s15 = scalar_lea.vmem %s1090_s3, %s622_s27  ;;  %s479_s30 = scalar_lea.sflag [#allocation4], %s999_s9 }
  0x45   : > { %386 = vmatpush1.msra.mxu0 %v358_v8  ;;  %v339_v19 = vmul.f32 %v338_v16, %v338_v16  ;;  %v350_v21 = vld [vmem:[%s1003_s13 + $0x20] sm:$0xff]  ;;  %v348_v24 = vld [vmem:[%s1003_s13 + $0x10] sm:$0xff]  ;;  %s767_s12 = scalar_lea.vmem %s496_s11, 256  ;;  %s860_s14 = smov [#allocation7]  }
  0x46   : > { %387 = vmatprep.subr.mxu0 %v357_v9  ;;  %v346_v26 = vld [vmem:[%s1003_s13] sm:$0xff]  ;;  %p768_p0 = scmp.ne.s32.totalorder %s496_s11, %s767_s12  ;;  %s771_s21 = sshll.u32 %s860_s14, 4  ;;  %s772_s21 = int_to_ptr.vmem [resolvable:$false] %s771_s21 }
  0x47   : > { %388 = vmatpush1.msra.mxu0 %v356_v10  ;;  %v341_v22 = vsel %vm340_vm0, %v339_v19, 0.0  ;;  %v441_v32 = vld [vmem:[%s327_s15] sm:$0x3]  ;;  %s773_s16 = scalar_lea.vmem %s772_s21, 512  ;;  %p774_p5 = scmp.lt.s32.totalorder %s496_s11, %s772_s21 }
  0x48   : > { %389 = vmatprep.subr.mxu0 %v355_v11  ;;  %342 = vadd.xlane.f32.xlu0 %v341_v22  ;;  %v451_v34 = vrot.slane %v441_v32, %v450_v31  ;;  %v455_v36 = vrot.slane %v441_v32, %v454_v33  ;;  %p769_p2 = pnand %p768_p0, %p942_p9  ;;  %p775_p6 = scmp.lt.s32.totalorder %s773_s16, %s767_s12 }
  0x49   : > { %390 = vmatpush1.msra.mxu0 %v354_v15 }
  0x4a   : > { %391 = vmatprep.subr.mxu0 %v353_v17  ;;  %p770_p4 = pneg %p769_p2  ;;  %p776_p7 = por %p775_p6, %p774_p5 }
  0x4b   : > { %392 = vmatpush1.msra.mxu0 %v352_v18 }
  0x4c   : > { %393 = vmatprep.subr.mxu0 %v351_v20  ;;  %p777_p1 = pnand %p776_p7, %p770_p4 }
  0x4d   : > { %394 = vmatpush1.msra.mxu0 %v350_v21 }
  0x4e   : > { %395 = vmatprep.subr.mxu0 %v349_v23 }
  0x4f   : > { %396 = vmatpush1.msra.mxu0 %v348_v24 }
  0x50   : > { %397 = vmatprep.subr.mxu0 %v347_v25 }
  0x51   : > { %398 = vmatpush1.msra.mxu0 %v346_v26 }
  0x52   : > { %624 = vmatmul.mubr.msk.f32.vlgmr.msra.gmra.mxu0 %vm340_vm0, %v338_v16 }
  0x5e   : > { %444 = vperm.xlu0 %706, %v440_v14  }
  0x62   : > { %708 = vset.pattern.permute.xlu0 %v859_v2 }
  0xbf   : > { %v464_v43 = vpop.permute.xlu1 %463 }
  0xd1   : > { %v343_v27 = vpop.xlane.xlu0 %342 }
  0xd2   : > { %v344_v28 = vadd.f32 1e-08, %v343_v27 }
  0xd4   : > { %709 = vrsqrt.f32 %v344_v28 }
  0xd9   : > { %v445_v35 = vpop.permute.xlu0 %444 }
  0xda   : > { %v458_v38 = vmul.f32 %v451_v34, %v445_v35  ;;  %v459_v41 = vmul.f32 %v455_v36, %v445_v35 }
  0xe1   : > { %v710_v37 = vpop.eup %709 }
 0x112   : > { %v433_v39 = vpop.f32.mrf.mxu0 }
 0x113   : > { %v438_v40 = vmul.f32 %v710_v37, %v433_v39 }
 0x114   : > { %v435_v42 = vpop.f32.mrf.mxu0 }
 0x115   : > { %v439_v44 = vmul.f32 %v710_v37, %v435_v42  ;;  %v460_v45 = vadd.f32 %v458_v38, %v438_v40 }
 0x117   : > { %v461_v46 = vadd.f32 %v459_v41, %v439_v44  ;;  %v466_v47 = vadd.f32 %v464_v43, %v460_v45 }
 0x119   : > { %v467_v48 = vadd.f32 %v464_v43, %v461_v46  ;;  %vm468_vm1 = vcmp.ge.f32.partialorder %v466_v47, 0.0  ;;  %v470_v49 = vmul.f32 0.2, %v466_v47 }
 0x11b   : > { %vm469_vm2 = vcmp.ge.f32.partialorder %v467_v48, 0.0  ;;  %v471_v50 = vmul.f32 0.2, %v467_v48  ;;  %v472_v51 = vsel %vm468_vm1, %v466_v47, %v470_v49 }
 0x11c   : > { %v474_v52 = vmul.f32 1.4142135, %v472_v51 }
 0x11d   : > { %v473_v53 = vsel %vm469_vm2, %v467_v48, %v471_v50 }
 0x11e   : > { %v475_v54 = vmul.f32 1.4142135, %v473_v53  ;;  %476 = vst [vmem:[%s318_s10] sm:$0xff] %v474_v52 }
 0x120   : > { %477 = vst [vmem:[%s318_s10 + $0x8] sm:$0xff] %v475_v54 }
 0x121   : > { %780 = shalt.err (!%p777_p1)
}
 0x122   : > { %s781_s25 = scalar_lea.hbm %s493_s26, 256  ;;  %s785_s28 = scalar_lea.hbm %s1092_s5, 512 }
 0x123   : > { %p782_p10 = scmp.ne.s32.totalorder %s493_s26, %s781_s25  ;;  %p786_p8 = scmp.lt.s32.totalorder %s493_s26, %s1092_s5 }
 0x124   : > { %p787_p0 = scmp.lt.s32.totalorder %s785_s28, %s781_s25 }
 0x125   : > { %p783_p13 = pnand %p782_p10, %p942_p9 }
 0x126   : > { %p788_p2 = por %p787_p0, %p786_p8 }
 0x127   : > { %p784_p3 = pneg %p783_p13 }
 0x129   : > { %p789_p12 = pnand %p788_p2, %p784_p3 }
 0x12b   : > { %792 = shalt.err (!%p789_p12)
}
 0x12c   : > { %638 = dma.vmem_to_hbm [thread:$0]  (%p942_p9), %s496_s11, 256, %s493_s26, %s479_s30  }
 0x12d PF: > { %s507_s17 = sand.u32 1, %s831_s18   ;;  %p1103_p4 = scmp.ge.s32.totalorder %s851_s23, 2 }
 0x12e   : > { %s508_s24 = scalar_lea.sflag [#allocation4], %s507_s17 }
 0x12f   : > { %p648_p5 = pnand %p1103_p4, %p949_p11 }
 0x131   : > { %p649_p6 = pneg %p648_p5 }
 0x133   : > { %826 = dma.done.wait (%p649_p6), %s508_s24, 256  }
 0x134   : > { %828 = vsyncadd (%p649_p6), %s508_s24, 4294967040  ;;  %s24_s23 = sadd.s32 1, %s851_s23   ;;  %s1104_s6 = sld [smem:[#allocation11_spill]] }
 0x135   : > { %p21_p7 = scmp.ge.s32.totalorder %s24_s23, 4   ;;  %s1105_s18 = smov %s835_s19 }
 0x136   : > { %s1106_s19 = smov %s839_s20  ;;  %s1107_s20 = smov %s947_s7 }
 0x137   : > { %s1108_s21 = smov %s847_s22  ;;  %23 = sbr.rel (!%p21_p7) target bundleno = 10 (0xa), region = 101 }
 0x13a   : > { %s1109_s22 = smov %s1104_s6 }
 0x13c   :  { %513 = vsyncpa [#allocation3], 1 }
 0x13d   :  { %515 = vsyncpa [#allocation3 + $0x1], 1 }
 0x13e   :  { %516 = vsyncpa [#allocation6], 1 }
 0x13f   :  { %518 = vsyncpa [#allocation6 + $0x1], 1 }
 0x140   :  { %519 = vsyncpa [#allocation4], 1 }
 0x141   :  { %521 = vsyncpa [#allocation4 + $0x1], 1 }

</bundles_post_ra>
